<compile_context>
chip_gen: v7x
topology: tpu7x:2x2x1
jax: 0.10.0
libtpu: 0.0.40
codegen_flags: <defaults>
</compile_context>

<pallas_src>
import functools

import jax
import jax.numpy as jnp
from jax.experimental import pallas as pl
from jax.experimental.pallas import tpu as pltpu


_VMEM_LIMIT_BYTES = 48 * 1024 * 1024   # safe on v5e/v6e (128 MiB phys) and v7x (64 MiB phys)
_VMEM_TILE_BUDGET = 24 * 1024 * 1024   # target double-buffered working set (half the limit)


def _round_up(n, m):
    return ((n + m - 1) // m) * m


def _footprint_bytes(bm, tn, C):
    # Double-buffered f32 VMEM working set: x tile + out tile + cond tile +
    # W slab + bias slab.
    return 2 * 4 * (2 * bm * tn + bm * C + C * tn + tn)


def _cond_shift_kernel(x_ref, cond_ref, w_ref, b_ref, o_ref):
    # shift = cond @ W (MXU, f32 accumulate) fused with the elementwise add of
    # x and the bias (VPU).  One (bm, tn) tile per grid step.
    shift = jnp.dot(cond_ref[...], w_ref[...], preferred_element_type=jnp.float32)
    o_ref[...] = (
        x_ref[...].astype(jnp.float32) + shift + b_ref[...].astype(jnp.float32)
    ).astype(o_ref.dtype)


@functools.partial(jax.jit, static_argnames=("bm", "tn", "donate_x"))
def conditional_shift_forward(x, cond, w, b, *, bm=512, tn=1024, donate_x=False):
    """Forward pass of ConditionalShift with a Linear conditioner.

    x:    (B, D) float32
    cond: (B, C) float32
    w:    (C, D) float32   (transposed nn.Linear weight)
    b:    (1, D) float32
    Returns (y, logdet) with y = x + cond @ w + b and logdet = 0.
    """
    B, D = x.shape
    Cw, Dw = w.shape
    assert cond.shape[0] == B and cond.shape[1] == Cw and Dw == D and b.shape == (1, D)
    C = Cw

    # --- tile selection (no operand padding: Pallas masks partial trailing
    # --- blocks) -----------------------------------------------------------
    bm_eff = _round_up(min(bm, _round_up(B, 8)), 8)
    tn_eff = _round_up(min(tn, _round_up(D, 128)), 128)

    # VMEM-budget clamp (matters for large C): shrink tn first, then bm.
    while _footprint_bytes(bm_eff, tn_eff, C) > _VMEM_TILE_BUDGET and tn_eff > 128:
        tn_eff = max(128, _round_up(tn_eff // 2, 128))
    while _footprint_bytes(bm_eff, tn_eff, C) > _VMEM_TILE_BUDGET and bm_eff > 8:
        bm_eff = max(8, _round_up(bm_eff // 2, 8))
    # TODO(synk): for extremely large C (cond/W tiles alone exceed the budget)
    # add a K(=C) grid axis marked "arbitrary" with an f32 accumulator scratch.

    n_rows = pl.cdiv(B, bm_eff)
    n_feats = pl.cdiv(D, tn_eff)

    # If the whole problem fits a single grid step but there is a decent amount
    # of work, split the row axis so both v7x TensorCores get a share of the
    # "parallel" grid (costs only one extra ~0.35us step on 1-TC chips).
    if n_rows * n_feats < 2 and B >= 256:
        bm_eff = _round_up(pl.cdiv(B, 2), 8)
        n_rows = pl.cdiv(B, bm_eff)

    # Feature tiles OUTER, row tiles INNER -> W/b block indices are constant
    # across the inner sweep, so Pallas keeps them resident in VMEM.
    grid = (n_feats, n_rows)

    y = pl.pallas_call(
        _cond_shift_kernel,
        out_shape=jax.ShapeDtypeStruct((B, D), x.dtype),
        grid_spec=pltpu.PrefetchScalarGridSpec(
            num_scalar_prefetch=0,
            grid=grid,
            in_specs=[
                pl.BlockSpec((bm_eff, tn_eff), lambda j, i: (i, j)),  # x tile
                pl.BlockSpec((bm_eff, C), lambda j, i: (i, 0)),       # cond tile
                pl.BlockSpec((C, tn_eff), lambda j, i: (0, j)),       # W slab (resident over i)
                pl.BlockSpec((1, tn_eff), lambda j, i: (0, j)),       # bias slab (resident over i)
            ],
            out_specs=pl.BlockSpec((bm_eff, tn_eff), lambda j, i: (i, j)),
        ),
        compiler_params=pltpu.CompilerParams(
            dimension_semantics=("parallel", "parallel"),
            vmem_limit_bytes=_VMEM_LIMIT_BYTES,
        ),
        input_output_aliases=({0: 0} if donate_x else {}),
    )(x, cond, w, b)

    # Pure shift transform => log|det J| = 0 (the PyTorch module returns the
    # literal 0; a scalar zero matches that contract).
    logdet = jnp.zeros((), dtype=x.dtype)
    return y, logdet


if __name__ == "__main__":
    key = jax.random.PRNGKey(0)
    kx, kc, kw, kb = jax.random.split(key, 4)

    # --- test 1: small, tile-aligned shapes --------------------------------
    B, D, C = 8, 128, 32   # batch, feature dim, conditioning dim
    x = jax.random.normal(kx, (B, D), dtype=jnp.float32)
    cond = jax.random.normal(kc, (B, C), dtype=jnp.float32)

    bound = 1.0 / (C ** 0.5)
    w = jax.random.uniform(kw, (C, D), minval=-bound, maxval=bound, dtype=jnp.float32)
    b = jax.random.uniform(kb, (1, D), minval=-bound, maxval=bound, dtype=jnp.float32)

    y, logdet = conditional_shift_forward(x, cond, w, b)
    y = jax.block_until_ready(y)

    y_ref = x + cond @ w + b
    assert jnp.allclose(y, y_ref, atol=1e-5, rtol=1e-5), "mismatch vs reference"
    assert float(logdet) == 0.0

    # --- test 2: non-tile-aligned B and D (partial trailing blocks in both
    # --- dims, no wrapper padding), with x donated into y -------------------
    B2, D2 = 300, 200
    x2 = jax.random.normal(kx, (B2, D2), dtype=jnp.float32)
    cond2 = jax.random.normal(kc, (B2, C), dtype=jnp.float32)
    w2 = jax.random.uniform(kw, (C, D2), minval=-bound, maxval=bound, dtype=jnp.float32)
    b2 = jax.random.uniform(kb, (1, D2), minval=-bound, maxval=bound, dtype=jnp.float32)

    y2, logdet2 = conditional_shift_forward(
        x2, cond2, w2, b2, bm=64, tn=128, donate_x=True
    )
    y2 = jax.block_until_ready(y2)

    y2_ref = x2 + cond2 @ w2 + b2
    assert jnp.allclose(y2, y2_ref, atol=1e-5, rtol=1e-5), "mismatch (partial-block path)"
    assert float(logdet2) == 0.0

    print("KERNEL_OK")
</pallas_src>

<mosaic_0001>
module attributes {stable_mosaic.version = 11 : i64} {
  func.func @_cond_shift_kernel(%arg0: i32, %arg1: i32, %arg2: memref<8x128xf32, #tpu.memory_space<vmem>>, %arg3: memref<8x32xf32, #tpu.memory_space<vmem>>, %arg4: memref<32x128xf32, #tpu.memory_space<vmem>>, %arg5: memref<1x128xf32, #tpu.memory_space<vmem>>, %arg6: memref<8x128xf32, #tpu.memory_space<vmem>>) attributes {dimension_semantics = [#tpu.dimension_semantics<parallel>, #tpu.dimension_semantics<parallel>], iteration_bounds = array<i64: 1, 1>, scalar_prefetch = 0 : i64, scratch_operands = 0 : i64, tpu.core_type = #tpu.core_type<tc>, window_params = [{transform_indices = @transform_0, window_bounds = array<i64: 8, 128>}, {transform_indices = @transform_1, window_bounds = array<i64: 8, 32>}, {transform_indices = @transform_2, window_bounds = array<i64: 32, 128>}, {transform_indices = @transform_3, window_bounds = array<i64: 1, 128>}, {transform_indices = @transform_4, window_bounds = array<i64: 8, 128>}]} {
    %c0 = arith.constant 0 : index
    %c0_0 = arith.constant 0 : index
    %0 = vector.load %arg3[%c0, %c0_0] : memref<8x32xf32, #tpu.memory_space<vmem>>, vector<8x32xf32>
    %c0_1 = arith.constant 0 : index
    %c0_2 = arith.constant 0 : index
    %1 = vector.load %arg4[%c0_1, %c0_2] : memref<32x128xf32, #tpu.memory_space<vmem>>, vector<32x128xf32>
    %cst = arith.constant dense<0.000000e+00> : vector<8x128xf32>
    %2 = tpu.matmul %0, %1, %cst {dimension_numbers = #tpu.dot_dimension_numbers<[1], [0], [0], [1], [0, 0, 1, 1], [], []>} : vector<8x32xf32>, vector<32x128xf32>, vector<8x128xf32> -> vector<8x128xf32>
    %c0_3 = arith.constant 0 : index
    %c0_4 = arith.constant 0 : index
    %3 = vector.load %arg2[%c0_3, %c0_4] : memref<8x128xf32, #tpu.memory_space<vmem>>, vector<8x128xf32>
    %4 = arith.addf %3, %2 : vector<8x128xf32>
    %c0_5 = arith.constant 0 : index
    %c0_6 = arith.constant 0 : index
    %5 = vector.load %arg5[%c0_5, %c0_6] : memref<1x128xf32, #tpu.memory_space<vmem>>, vector<1x128xf32>
    %6 = vector.broadcast %5 : vector<1x128xf32> to vector<8x128xf32>
    %7 = arith.addf %4, %6 : vector<8x128xf32>
    %c0_7 = arith.constant 0 : index
    %c0_8 = arith.constant 0 : index
    %8 = vector.load %arg6[%c0_7, %c0_8] : memref<8x128xf32, #tpu.memory_space<vmem>>, vector<8x128xf32>
    tpu.vector_store %arg6[%c0_7, %c0_8], %7 {strides = array<i32>} : memref<8x128xf32, #tpu.memory_space<vmem>>, vector<8x128xf32>,
    return
  }
  func.func @transform_0(%arg0: i32, %arg1: i32) -> (i32, i32) {
    %c0_i32 = arith.constant 0 : i32
    return %arg1, %arg0 : i32, i32
  }
  func.func @transform_1(%arg0: i32, %arg1: i32) -> (i32, i32) {
    %c0_i32 = arith.constant 0 : i32
    %c0_i32_0 = arith.constant 0 : i32
    return %arg1, %c0_i32 : i32, i32
  }
  func.func @transform_2(%arg0: i32, %arg1: i32) -> (i32, i32) {
    %c0_i32 = arith.constant 0 : i32
    %c0_i32_0 = arith.constant 0 : i32
    return %c0_i32, %arg0 : i32, i32
  }
  func.func @transform_3(%arg0: i32, %arg1: i32) -> (i32, i32) {
    %c0_i32 = arith.constant 0 : i32
    %c0_i32_0 = arith.constant 0 : i32
    return %c0_i32, %arg0 : i32, i32
  }
  func.func @transform_4(%arg0: i32, %arg1: i32) -> (i32, i32) {
    %c0_i32 = arith.constant 0 : i32
    return %arg1, %arg0 : i32, i32
  }
}

</mosaic_0001>

<bundles_post_ra>
// kernel: conditional_shift_forward.1
= control target key start
LH: loop header
LB: loop body
LE: loop exit
PB: predicated region body
PF: predicated region fallthrough
CT: control target
= control target key end

     0   :  { %9 = vsyncpa [#allocation3], 0  ;;  %s373_s0 = inlined_call_operand.hbm [shape: f32[8,128], index: 0, kind: input, shape index: {}]   ;;  %s374_s1 = inlined_call_operand.hbm [shape: f32[8,32], index: 1, kind: input, shape index: {}]   ;;  %s375_s2 = inlined_call_operand.hbm [shape: f32[32,128], index: 2, kind: input, shape index: {}]   ;;  %s376_s3 = inlined_call_operand.vmem [shape: f32[1,128], index: 3, kind: input, shape index: {}]   ;;  %s377_s4 = inlined_call_operand.hbm [shape: f32[8,128], index: 4, kind: output, shape index: {}]  }
   0x1   :  { %10 = vsyncpa [#allocation6], 0 }
   0x2   :  { %11 = vsyncpa [#allocation4], 0  ;;  %s288_s15 = smov [#allocation5]   ;;  %s289_s17 = smov [#allocation2]  }
   0x3   :  { %s28_s16 = sshll.u32 %s288_s15, 4  ;;  %s18_s18 = sshll.u32 %s289_s17, 4  ;;  %s29_s16 = int_to_ptr.vmem [resolvable:$true] %s28_s16  ;;  %s19_s18 = int_to_ptr.vmem [resolvable:$true] %s18_s18 }
   0x4   :  { %s194_s21 = scalar_lea.hbm %s374_s1, 128 }
   0x5   :  { %p195_p0 = scmp.ne.s32.totalorder %s374_s1, %s194_s21  ;;  %p198_p1 = scmp.lt.u32.totalorder %s194_s21, %s374_s1 }
   0x7   :  { %p200_p2 = pnand %p198_p1, %p195_p0 }
   0x9   :  { %203 = shalt.err (!%p200_p2)
}
   0xa   :  { %s204_s26 = scalar_lea.vmem %s29_s16, 128  ;;  %p209_p4 = scmp.lt.s32.totalorder %s29_s16, %s29_s16 }
   0xb   :  { %p205_p3 = scmp.ne.s32.totalorder %s29_s16, %s204_s26  ;;  %p210_p5 = scmp.lt.s32.totalorder %s204_s26, %s204_s26 }
   0xd   :  { %p211_p6 = por %p210_p5, %p209_p4 }
   0xf   :  { %p212_p7 = pnand %p211_p6, %p205_p3 }
  0x11   :  { %215 = shalt.err (!%p212_p7)
}
  0x12   :  { %31 = dma.hbm_to_vmem [thread:$0]  %s374_s1, 128, %s29_s16, [#allocation6]  }
  0x13   :  { %s216_s5 = scalar_lea.hbm %s373_s0, 128 }
  0x14   :  { %p217_p8 = scmp.ne.s32.totalorder %s373_s0, %s216_s5  ;;  %p220_p9 = scmp.lt.u32.totalorder %s216_s5, %s373_s0 }
  0x16   :  { %p222_p10 = pnand %p220_p9, %p217_p8 }
  0x18   :  { %225 = shalt.err (!%p222_p10)
}
  0x19   :  { %s226_s10 = scalar_lea.vmem %s19_s18, 128  ;;  %p231_p12 = scmp.lt.s32.totalorder %s19_s18, %s19_s18 }
  0x1a   :  { %p227_p11 = scmp.ne.s32.totalorder %s19_s18, %s226_s10  ;;  %p232_p13 = scmp.lt.s32.totalorder %s226_s10, %s226_s10 }
  0x1c   :  { %p233_p0 = por %p232_p13, %p231_p12 }
  0x1e   :  { %p234_p1 = pnand %p233_p0, %p227_p11 }
  0x20   :  { %237 = shalt.err (!%p234_p1)
}
  0x21   :  { %21 = dma.hbm_to_vmem [thread:$0]  %s373_s0, 128, %s19_s18, [#allocation3]  }
  0x22   :  { %s290_s12 = smov [#allocation7]   ;;  %s238_s16 = scalar_lea.hbm %s375_s2, 512 }
  0x23   :  { %s37_s13 = sshll.u32 %s290_s12, 4  ;;  %p239_p2 = scmp.ne.s32.totalorder %s375_s2, %s238_s16  ;;  %s38_s13 = int_to_ptr.vmem [resolvable:$true] %s37_s13 }
  0x24   :  { %p242_p3 = scmp.lt.u32.totalorder %s238_s16, %s375_s2 }
  0x26   :  { %p244_p4 = pnand %p242_p3, %p239_p2 }
  0x28   :  { %247 = shalt.err (!%p244_p4)
}
  0x29   :  { %s248_s22 = scalar_lea.vmem %s38_s13, 512  ;;  %p253_p6 = scmp.lt.s32.totalorder %s38_s13, %s38_s13 }
  0x2a   :  { %p249_p5 = scmp.ne.s32.totalorder %s38_s13, %s248_s22  ;;  %p254_p7 = scmp.lt.s32.totalorder %s248_s22, %s248_s22 }
  0x2c   :  { %p255_p8 = por %p254_p7, %p253_p6 }
  0x2e   :  { %p256_p9 = pnand %p255_p8, %p249_p5 }
  0x30   :  { %259 = shalt.err (!%p256_p9)
}
  0x31   :  { %s291_s0 = smov 128   ;;  %s292_s18 = smov 8  }
  0x32   :  { %43 = dma.hbm_to_vmem [thread:$0]  %s375_s2, 512, %s38_s13, [#allocation6], %s291_s0, %s291_s0, %s292_s18  }
  0x33   :  { %282 = dma.done.wait [#allocation3], 128  }
  0x34   :  { %283 = vsyncadd [#allocation3], 4294967168 }
  0x35   :  { %284 = dma.done.wait [#allocation6], 640  }
  0x36   :  { %285 = vsyncadd [#allocation6], 4294966656  ;;  %v293_v0 = vmov 0.0|0.0   ;;  %vm294_vm0 = vmmov 0   ;;  %v295_v1 = vmov 0.0   ;;  %v56_v2 = vld [vmem:[#allocation7] sm:$0xff] }
  0x37   :  { %179 = vmatprep.subr.bf16.mxu0 %v293_v0  ;;  %176 = vmatprep.mubr.msk.f32.mxu0 %vm294_vm0, %v295_v1  ;;  %v57_v3 = vld [vmem:[#allocation7 + $0x8] sm:$0xff]  ;;  %v58_v4 = vld [vmem:[#allocation7 + $0x10] sm:$0xff]  ;;  %v59_v6 = vld [vmem:[#allocation7 + $0x18] sm:$0xff]  ;;  %vm60_vm1 = vcmask 261120   ;;  %s296_s26 = smov [#allocation8]  }
  0x38   :  { %v180_v5 = vpack.c.bf16 %v57_v3, %v56_v2  ;;  %v183_v7 = vpack.c.bf16 %v59_v6, %v58_v4  ;;  %v55_v8 = vld [vmem:[#allocation5] sm:$0xff]  ;;  %v134_v9 = vld [vmem:[#allocation2] sm:$0xff]  ;;  %s151_s27 = sshll.u32 %s296_s26, 4  ;;  %s152_s27 = int_to_ptr.vmem [resolvable:$true] %s151_s27 }
  0x39   :  { %v162_v11 = vld [vmem:[%s376_s3] ss:$0 sm:$0xff]  ;;  %s260_s28 = scalar_lea.vmem %s152_s27, 128  ;;  %p265_p11 = scmp.lt.s32.totalorder %s152_s27, %s152_s27 }
  0x3a   :  { %181 = vmatpush3.bf16.msra.mxu0 %v180_v5  ;;  %p261_p10 = scmp.ne.s32.totalorder %s152_s27, %s260_s28  ;;  %p266_p12 = scmp.lt.s32.totalorder %s260_s28, %s260_s28 }
  0x3b   :  { %182 = vmatprep.subr.bf16.mxu0 %v293_v0 }
  0x3c   :  { %p267_p13 = por %p266_p12, %p265_p11 }
  0x3e   :  { %184 = vmatpush3.bf16.msra.mxu0 %v183_v7  ;;  %p268_p0 = pnand %p267_p13, %p261_p10 }
  0x41   :  { %177 = vmatmul.mubr.msk.f32.vlgmr.msra.gmra.mrb[0].mxu0 %vm60_vm1, %v55_v8 }
 0x114   :  { %v130_v10 = vpop.f32.mrb[0].mxu0 }
 0x115   :  { %v135_v12 = vadd.f32 %v134_v9, %v130_v10  ;;  %v178_v13 = vpop.f32.mrb[1].mxu0 }
 0x117   :  { %v143_v14 = vadd.f32 %v162_v11, %v135_v12 }
 0x119   :  { %144 = vst [vmem:[#allocation8] sm:$0xff] %v143_v14 }
 0x11a   :  { %271 = shalt.err (!%p268_p0)
}
 0x11b   :  { %s272_s5 = scalar_lea.hbm %s377_s4, 128 }
 0x11c   :  { %p273_p1 = scmp.ne.s32.totalorder %s377_s4, %s272_s5  ;;  %p276_p2 = scmp.lt.u32.totalorder %s272_s5, %s377_s4 }
 0x11e   :  { %p278_p3 = pnand %p276_p2, %p273_p1 }
 0x120   :  { %281 = shalt.err (!%p278_p3)
}
 0x121   :  { %154 = dma.vmem_to_hbm [thread:$0]  %s152_s27, 128, %s377_s4, [#allocation4]  }
 0x122   :  { %286 = dma.done.wait [#allocation4], 128  }
 0x123   :  { %287 = vsyncadd [#allocation4], 4294967168 }
 0x124   :  { %158 = vsyncpa [#allocation3], 1 }
 0x125   :  { %159 = vsyncpa [#allocation6], 1 }
 0x126   :  { %160 = vsyncpa [#allocation4], 1 }

</bundles_post_ra>
